<compile_context>
chip_gen: v7x
topology: tpu7x:2x2x1
jax: 0.10.0
libtpu: 0.0.40
codegen_flags: <defaults>
</compile_context>

<pallas_src>
import functools

import jax
import jax.numpy as jnp
import numpy as np
from jax.experimental import pallas as pl
from jax.experimental.pallas import tpu as pltpu


def _round_up(x, m):
    return ((x + m - 1) // m) * m


def _kd_kernel(x_ref, t_ref, *rest, alpha, c_old, use_new, has_mask,
               accumulate, hw, tp):
    """One (batch, pixel-tile) grid step.

    x_ref:   (1, CB, TP)    new-model raw scores (CB = C or C_old channels)
    t_ref:   (1, C_old, TP) old-model raw scores
    m_ref:   (1, 1, TP)     optional pixel mask (present iff has_mask)
    out_ref: (1, 1, TP)     accumulate=True : per-batch running lane sums
                            accumulate=False: per-pixel -loss for this tile
    """
    if has_mask:
        m_ref, out_ref = rest
    else:
        m_ref, out_ref = None, rest[0]

    ti = pl.program_id(1)

    x = x_ref[0].astype(jnp.float32)        # (CB, TP)
    t = t_ref[0].astype(jnp.float32)        # (C_old, TP)

    # log_softmax over the channel axis (sublanes), narrowed to the old classes.
    src = x if use_new else x[:c_old]
    xm = jnp.max(src, axis=0, keepdims=True)
    lse = jnp.log(jnp.sum(jnp.exp(src - xm), axis=0, keepdims=True)) + xm
    logp = src[:c_old] - lse                # (C_old, TP)

    # sum_c softmax(alpha*t)_c * logp_c  ==  sum_c(e_c * logp_c) / sum_c(e_c)
    ta = t * jnp.float32(alpha) if alpha != 1.0 else t
    tm = jnp.max(ta, axis=0, keepdims=True)
    te = jnp.exp(ta - tm)
    num = jnp.sum(te * logp, axis=0, keepdims=True)     # (1, TP)
    den = jnp.sum(te, axis=0, keepdims=True)            # (1, TP)
    # exact reciprocal (approx=False) keeps ~1e-6 parity with the reference
    loss = num * pl.reciprocal(den, approx=False)       # (1, TP)

    if has_mask:
        loss = loss * m_ref[0].astype(jnp.float32)

    if hw % tp != 0:
        # Ragged last tile: zero lanes past the true pixel count so garbage in
        # the partially-read block never reaches the reduction.
        lane = jax.lax.broadcasted_iota(jnp.int32, (1, tp), 1)
        loss = jnp.where(lane + ti * tp < hw, loss, 0.0)

    if accumulate:
        @pl.when(ti == 0)
        def _():
            out_ref[...] = jnp.zeros_like(out_ref)
        out_ref[0] += loss
    else:
        out_ref[0] = -loss


def knowledge_distillation_loss(inputs, targets, mask=None, *,
                                reduction="mean", alpha=1.0, use_new=False,
                                tile_pixels=None):
    """JAX/Pallas port of KnowledgeDistillationLoss.forward.

    inputs:  (B, C, H, W)      new-model raw scores
    targets: (B, C_old, H, W)  old-model raw scores, C_old <= C
    mask:    optional (B, H, W)
    """
    B, C, H, W = inputs.shape
    Bt, C_old, Ht, Wt = targets.shape
    assert (B, H, W) == (Bt, Ht, Wt) and C_old <= C

    HW = H * W

    # Channels actually streamed for the new-model scores:
    #   use_new=True  -> all C channels are needed for the log_softmax.
    #   use_new=False -> only the first C_old; stream just those when the
    #                    sublane constraint (multiple of 8) allows it, otherwise
    #                    stream all C and narrow in-kernel (no wrapper slice).
    if use_new or C_old == C:
        cb = C
    elif C_old % 8 == 0:
        cb = C_old
    else:
        cb = C

    # Free reshapes (merge trailing contiguous dims); no dtype casts here — the
    # kernel casts per block (bf16 inputs keep half the read bandwidth).
    x = inputs.reshape(B, C, HW)
    t = targets.reshape(B, C_old, HW)
    m = None
    if mask is not None:
        m = mask.reshape(B, 1, HW)
        if m.dtype == jnp.bool_:
            m = m.astype(jnp.float32)

    # Pixel tile: lane-dense and as large as a modest VMEM budget allows
    # (double-buffered blocks stay well under v7x's smaller scoped VMEM).
    bpp = cb * jnp.dtype(x.dtype).itemsize + C_old * jnp.dtype(t.dtype).itemsize + 4
    if m is not None:
        bpp += jnp.dtype(m.dtype).itemsize
    if tile_pixels is None:
        TP = min(8192, max(128, (HW // 128) * 128))
        while TP > 512 and 2 * bpp * TP > 8 * 1024 * 1024:
            TP = max(512, ((TP // 2) // 128) * 128)
    else:
        TP = max(128, _round_up(int(tile_pixels), 128))
    TP = min(TP, _round_up(HW, 128))

    # Tiny-image edge case only (HW smaller than one tile and not lane-aligned):
    # pad up to a single 128-lane tile; the in-kernel lane mask excludes the pad.
    HWp = HW
    if HWp % 128 != 0 and HWp < TP:
        HWp = _round_up(HW, 128)
        pad = ((0, 0), (0, 0), (0, HWp - HW))
        x = jnp.pad(x, pad)
        t = jnp.pad(t, pad)
        if m is not None:
            m = jnp.pad(m, pad)
        TP = min(TP, HWp)

    NT = (HWp + TP - 1) // TP
    grid = (B, NT)
    accumulate = reduction in ("mean", "sum")

    kernel = functools.partial(
        _kd_kernel, alpha=float(alpha), c_old=int(C_old),
        use_new=bool(use_new), has_mask=m is not None,
        accumulate=accumulate, hw=int(HW), tp=int(TP))

    in_specs = [
        pl.BlockSpec((1, cb, TP), lambda b, ti: (b, 0, ti)),
        pl.BlockSpec((1, C_old, TP), lambda b, ti: (b, 0, ti)),
    ]
    args = [x, t]
    if m is not None:
        in_specs.append(pl.BlockSpec((1, 1, TP), lambda b, ti: (b, 0, ti)))
        args.append(m)

    if accumulate:
        # Per-batch lane-parallel partial sums, resident across the pixel tiles
        # of each batch; final reduction + scaling happens in JAX.
        acc = pl.pallas_call(
            kernel,
            out_shape=jax.ShapeDtypeStruct((B, 1, TP), jnp.float32),
            grid_spec=pltpu.PrefetchScalarGridSpec(
                num_scalar_prefetch=0,
                grid=grid,
                in_specs=in_specs,
                out_specs=pl.BlockSpec((1, 1, TP), lambda b, ti: (b, 0, 0)),
            ),
            compiler_params=pltpu.CompilerParams(
                dimension_semantics=("parallel", "arbitrary"),
                vmem_limit_bytes=32 * 1024 * 1024),
        )(*args)
        total = jnp.sum(acc)
        if reduction == "mean":
            # torch.mean divides by B*H*W regardless of the mask
            return -total / jnp.float32(B * HW)
        return -total

    # reduction == 'none' (or any other string, matching the PyTorch fallthrough)
    per_pixel_neg = pl.pallas_call(
        kernel,
        out_shape=jax.ShapeDtypeStruct((B, 1, HWp), jnp.float32),
        grid_spec=pltpu.PrefetchScalarGridSpec(
            num_scalar_prefetch=0,
            grid=grid,
            in_specs=in_specs,
            out_specs=pl.BlockSpec((1, 1, TP), lambda b, ti: (b, 0, ti)),
        ),
        compiler_params=pltpu.CompilerParams(
            dimension_semantics=("parallel", "parallel"),
            vmem_limit_bytes=32 * 1024 * 1024),
    )(*args)
    return per_pixel_neg[:, 0, :HW].reshape(B, H, W)


def _kd_ref(inputs, targets, mask=None, *, reduction="mean", alpha=1.0,
            use_new=False):
    """Pure-JAX reference mirroring the PyTorch forward."""
    if use_new:
        outputs = jax.nn.log_softmax(inputs, axis=1)[:, :targets.shape[1]]
    else:
        outputs = jax.nn.log_softmax(inputs[:, :targets.shape[1]], axis=1)
    labels = jax.nn.softmax(targets * alpha, axis=1)
    loss = jnp.sum(outputs * labels, axis=1)
    if mask is not None:
        loss = loss * mask.astype(loss.dtype)
    if reduction == "mean":
        return -jnp.mean(loss)
    if reduction == "sum":
        return -jnp.sum(loss)
    return -loss


if __name__ == "__main__":
    key = jax.random.PRNGKey(0)
    B, C, C_old, H, W = 2, 6, 4, 16, 16
    k1, k2, k3 = jax.random.split(key, 3)
    inputs = jax.random.normal(k1, (B, C, H, W), jnp.float32)
    targets = jax.random.normal(k2, (B, C_old, H, W), jnp.float32)
    mask = (jax.random.uniform(k3, (B, H, W)) > 0.3).astype(jnp.float32)

    # default config: reduction='mean', alpha=1.0, use_new=False
    out = knowledge_distillation_loss(inputs, targets)
    jax.block_until_ready(out)
    np.testing.assert_allclose(np.asarray(out),
                               np.asarray(_kd_ref(inputs, targets)),
                               rtol=1e-5, atol=1e-5)

    # use_new=True + mask, mean reduction, alpha=2
    out2 = knowledge_distillation_loss(inputs, targets, mask,
                                       use_new=True, alpha=2.0)
    jax.block_until_ready(out2)
    np.testing.assert_allclose(
        np.asarray(out2),
        np.asarray(_kd_ref(inputs, targets, mask, use_new=True, alpha=2.0)),
        rtol=1e-5, atol=1e-5)

    # reduction='none' per-pixel output
    out3 = knowledge_distillation_loss(inputs, targets, mask, reduction="none")
    jax.block_until_ready(out3)
    np.testing.assert_allclose(
        np.asarray(out3),
        np.asarray(_kd_ref(inputs, targets, mask, reduction="none")),
        rtol=1e-5, atol=1e-5)

    # ragged pixel count (HW=180, not a multiple of 128) + sum reduction:
    # exercises the partial final tile / in-kernel lane mask / multi-tile accum.
    H2, W2 = 12, 15
    j1, j2, j3 = jax.random.split(jax.random.PRNGKey(1), 3)
    inputs2 = jax.random.normal(j1, (B, C, H2, W2), jnp.float32)
    targets2 = jax.random.normal(j2, (B, C_old, H2, W2), jnp.float32)
    mask2 = (jax.random.uniform(j3, (B, H2, W2)) > 0.5).astype(jnp.float32)
    out4 = knowledge_distillation_loss(inputs2, targets2, mask2, reduction="sum")
    jax.block_until_ready(out4)
    np.testing.assert_allclose(
        np.asarray(out4),
        np.asarray(_kd_ref(inputs2, targets2, mask2, reduction="sum")),
        rtol=1e-5, atol=1e-4)

    print("KERNEL_OK")
</pallas_src>

<mosaic_0001>
module attributes {stable_mosaic.version = 11 : i64} {
  func.func @_kd_kernel(%arg0: i32, %arg1: i32, %arg2: memref<1x6x256xf32, #tpu.memory_space<vmem>>, %arg3: memref<1x4x256xf32, #tpu.memory_space<vmem>>, %arg4: memref<1x1x256xf32, #tpu.memory_space<vmem>>) attributes {dimension_semantics = [#tpu.dimension_semantics<parallel>, #tpu.dimension_semantics<arbitrary>], iteration_bounds = array<i64: 2, 1>, scalar_prefetch = 0 : i64, scratch_operands = 0 : i64, tpu.core_type = #tpu.core_type<tc>, window_params = [{transform_indices = @transform_0, window_bounds = array<i64: 1, 6, 256>}, {transform_indices = @transform_1, window_bounds = array<i64: 1, 4, 256>}, {transform_indices = @transform_2, window_bounds = array<i64: 1, 1, 256>}]} {
    %c0 = arith.constant 0 : index
    %c0_0 = arith.constant 0 : index
    %c0_1 = arith.constant 0 : index
    %0 = vector.load %arg2[%c0, %c0_0, %c0_1] : memref<1x6x256xf32, #tpu.memory_space<vmem>>, vector<1x6x256xf32>
    %1 = vector.shape_cast %0 : vector<1x6x256xf32> to vector<6x256xf32>
    %c0_2 = arith.constant 0 : index
    %c0_3 = arith.constant 0 : index
    %c0_4 = arith.constant 0 : index
    %2 = vector.load %arg3[%c0_2, %c0_3, %c0_4] : memref<1x4x256xf32, #tpu.memory_space<vmem>>, vector<1x4x256xf32>
    %3 = vector.shape_cast %2 : vector<1x4x256xf32> to vector<4x256xf32>
    %4 = vector.extract_strided_slice %1 {offsets = [0, 0], sizes = [4, 256], strides = [1, 1]} : vector<6x256xf32> to vector<4x256xf32>
    %cst = arith.constant dense<0xFF800000> : vector<256xf32>
    %5 = vector.multi_reduction <maximumf>, %4, %cst [0] : vector<4x256xf32> to vector<256xf32>
    %6 = vector.shape_cast %5 : vector<256xf32> to vector<1x256xf32>
    %7 = vector.broadcast %6 : vector<1x256xf32> to vector<4x256xf32>
    %8 = arith.subf %4, %7 : vector<4x256xf32>
    %9 = math.exp %8 : vector<4x256xf32>
    %cst_5 = arith.constant dense<0.000000e+00> : vector<256xf32>
    %10 = vector.multi_reduction <add>, %9, %cst_5 [0] : vector<4x256xf32> to vector<256xf32>
    %11 = vector.shape_cast %10 : vector<256xf32> to vector<1x256xf32>
    %12 = math.log %11 : vector<1x256xf32>
    %13 = arith.addf %12, %6 : vector<1x256xf32>
    %14 = vector.broadcast %13 : vector<1x256xf32> to vector<4x256xf32>
    %15 = arith.subf %4, %14 : vector<4x256xf32>
    %cst_6 = arith.constant dense<0xFF800000> : vector<256xf32>
    %16 = vector.multi_reduction <maximumf>, %3, %cst_6 [0] : vector<4x256xf32> to vector<256xf32>
    %17 = vector.shape_cast %16 : vector<256xf32> to vector<1x256xf32>
    %18 = vector.broadcast %17 : vector<1x256xf32> to vector<4x256xf32>
    %19 = arith.subf %3, %18 : vector<4x256xf32>
    %20 = math.exp %19 : vector<4x256xf32>
    %21 = arith.mulf %20, %15 : vector<4x256xf32>
    %cst_7 = arith.constant dense<0.000000e+00> : vector<256xf32>
    %22 = vector.multi_reduction <add>, %21, %cst_7 [0] : vector<4x256xf32> to vector<256xf32>
    %23 = vector.shape_cast %22 : vector<256xf32> to vector<1x256xf32>
    %cst_8 = arith.constant dense<0.000000e+00> : vector<256xf32>
    %24 = vector.multi_reduction <add>, %20, %cst_8 [0] : vector<4x256xf32> to vector<256xf32>
    %25 = vector.shape_cast %24 : vector<256xf32> to vector<1x256xf32>
    %26 = tpu.reciprocal %25 : vector<1x256xf32> -> vector<1x256xf32>
    %27 = arith.mulf %23, %26 : vector<1x256xf32>
    %c0_i32 = arith.constant 0 : i32
    %28 = arith.cmpi eq, %arg1, %c0_i32 : i32
    %29 = arith.extui %28 : i1 to i32
    %c0_i32_9 = arith.constant 0 : i32
    %30 = arith.cmpi ne, %29, %c0_i32_9 : i32
    scf.if %30 {
      %cst_16 = arith.constant 0.000000e+00 : f32
      %37 = vector.broadcast %cst_16 : f32 to vector<1x1x256xf32>
      %c0_17 = arith.constant 0 : index
      %c0_18 = arith.constant 0 : index
      %c0_19 = arith.constant 0 : index
      %38 = vector.load %arg4[%c0_17, %c0_18, %c0_19] : memref<1x1x256xf32, #tpu.memory_space<vmem>>, vector<1x1x256xf32>
      tpu.vector_store %arg4[%c0_17, %c0_18, %c0_19], %37 {strides = array<i32>} : memref<1x1x256xf32, #tpu.memory_space<vmem>>, vector<1x1x256xf32>,
    } else {
    }
    %c0_10 = arith.constant 0 : index
    %c0_11 = arith.constant 0 : index
    %c0_12 = arith.constant 0 : index
    %31 = vector.load %arg4[%c0_10, %c0_11, %c0_12] : memref<1x1x256xf32, #tpu.memory_space<vmem>>, vector<1x1x256xf32>
    %32 = vector.shape_cast %31 : vector<1x1x256xf32> to vector<1x256xf32>
    %33 = arith.addf %32, %27 : vector<1x256xf32>
    %c0_13 = arith.constant 0 : index
    %c0_14 = arith.constant 0 : index
    %c0_15 = arith.constant 0 : index
    %34 = vector.load %arg4[%c0_13, %c0_14, %c0_15] : memref<1x1x256xf32, #tpu.memory_space<vmem>>, vector<1x1x256xf32>
    %35 = vector.shape_cast %34 : vector<1x1x256xf32> to vector<1x256xf32>
    %36 = vector.shape_cast %33 : vector<1x256xf32> to vector<1x1x256xf32>
    tpu.vector_store %arg4[%c0_13, %c0_14, %c0_15], %36 {strides = array<i32>} : memref<1x1x256xf32, #tpu.memory_space<vmem>>, vector<1x1x256xf32>,
    return
  }
  func.func @transform_0(%arg0: i32, %arg1: i32) -> (i32, i32, i32) {
    %c0_i32 = arith.constant 0 : i32
    %c0_i32_0 = arith.constant 0 : i32
    return %arg0, %c0_i32, %arg1 : i32, i32, i32
  }
  func.func @transform_1(%arg0: i32, %arg1: i32) -> (i32, i32, i32) {
    %c0_i32 = arith.constant 0 : i32
    %c0_i32_0 = arith.constant 0 : i32
    return %arg0, %c0_i32, %arg1 : i32, i32, i32
  }
  func.func @transform_2(%arg0: i32, %arg1: i32) -> (i32, i32, i32) {
    %c0_i32 = arith.constant 0 : i32
    %c0_i32_0 = arith.constant 0 : i32
    %c0_i32_1 = arith.constant 0 : i32
    return %arg0, %c0_i32, %c0_i32_0 : i32, i32, i32
  }
}

</mosaic_0001>

<bundles_post_ra>
// kernel: tpu_custom_call.1
= control target key start
LH: loop header
LB: loop body
LE: loop exit
PB: predicated region body
PF: predicated region fallthrough
CT: control target
= control target key end

     0   :  { %7 = vsyncpa [#allocation3], 0  ;;  %s802_s0 = inlined_call_operand.vmem [shape: f32[2,6,256], index: 0, kind: input, shape index: {}]   ;;  %s803_s1 = inlined_call_operand.vmem [shape: f32[2,4,256], index: 1, kind: input, shape index: {}]   ;;  %s804_s2 = inlined_call_operand.hbm [shape: f32[2,1,256], index: 2, kind: output, shape index: {}]  }
   0x1   :  { %9 = vsyncpa [#allocation3 + $0x1], 0  ;;  %s647_s9 = smov 0   ;;  %s649_s10 = smov 0  }
   0x2   :  { %s651_s11 = smov 0   ;;  %s653_s12 = smov 0  }
   0x3   :  { %s655_s13 = smov 0   ;;  %s657_s14 = smov 0  }
   0x4 LB: > { %s459_s15 = sadd.s32 4294967295, %s627_s14   ;;  %s460_s16 = sadd.s32 4294967294, %s627_s14   ;;  %s627_s14 = sphi %s657_s14, %s15_s14   ;;  %s623_s13 = sphi %s655_s13, %s813_s13   ;;  %s619_s12 = sphi %s653_s12, %s812_s12   ;;  %s615_s11 = sphi %s651_s11, %s811_s11   ;;  %s611_s10 = sphi %s649_s10, %s810_s10   ;;  %s607_s9 = sphi %s647_s9, %s809_s9  }
   0x5   : > { %s27_s17 = sadd.s32 1, %s623_s13  ;;  %s90_s18 = sadd.s32 1, %s615_s11 }
   0x6   : > { %p29_p0 = scmp.ge.s32.totalorder %s27_s17, 2  ;;  %p100_p1 = scmp.ne.s32.totalorder %s615_s11, %s611_s10 }
   0x7   : > { %p101_p2 = scmp.eq.s32.totalorder %s459_s15, 1  ;;  %p106_p3 = scmp.ne.s32.totalorder %s611_s10, %s607_s9 }
   0x8   : > { %s815_s17 = smov (%p29_p0, %s27_s17), 0  ;;  %p107_p5 = scmp.eq.s32.totalorder %s460_s16, 1 }
   0x9   : > { %p687_p4 = por %p101_p2, %p100_p1  ;;  %s87_s20 = ssub.s32 %s623_s13, %s815_s17 }
   0xa   : > { %p463_p6 = scmp.ge.s32.totalorder %s627_s14, 1  ;;  %p88_p7 = scmp.eq.s32.totalorder %s87_s20, 0 }
   0xb   : > { %p694_p8 = por %p107_p5, %p106_p3  ;;  %p151_p9 = scmp.lt.s32.totalorder %s627_s14, 3 }
   0xc   : > { %s700_s22 = scalar_select %p88_p7, %s615_s11, %s90_s18  }
   0xd   : > { %p152_p10 = pnand %p463_p6, %p151_p9 }
   0xe   : > { %s183_s23 = sand.u32 (!%p152_p10), 1, %s611_s10   ;;  %p187_p11 = scmp.lt.s32.totalorder (!%p152_p10), %s619_s12, 1  ;;  %v323_v0 = vlaneseq (!%p152_p10)  ;;  %v629_v2 = vmov (!%p152_p10), 0.0   ;;  %vm209_vm1 = vcmask (!%p152_p10), 1043456  }
   0xf   : > { %155 = sbr.rel (%p152_p10) target bundleno = 129 (0x81), region = 28  ;;  %s464_s24 = sshll.u32 (!%p152_p10), %s183_s23, 1 }
  0x10   : > { %vm707_vm0 = vcmp.lt.s32.totalorder (!%p152_p10), %v323_v0, 256  ;;  %s712_s26 = scalar_lea.vmem (!%p152_p10), [#allocation2], %s464_s24  ;;  %s476_s7 = sshll.u32 (!%p152_p10), %s619_s12, 5 }
  0x11   : > { %327 = vst.msk [vmem:[%s712_s26] sm:$0x3] (!%p152_p10), %vm707_vm0, %v629_v2  ;;  %s368_s8 = sshll.u32 (!%p152_p10), %s712_s26, 4  ;;  %s750_s18 = scalar_lea.hbm (!%p152_p10), %s804_s2, %s476_s7  ;;  %s752_s8 = int_to_ptr.vmem [resolvable:$true] %s368_s8 }
  0x12   : > { %s354_s20 = scalar_lea.sflag (!%p152_p10), [#allocation3], %s183_s23  ;;  %s549_s24 = scalar_lea.vmem (!%p152_p10), %s752_s8, 32 }
  0x13   : > { %p550_p12 = scmp.ne.s32.totalorder (!%p152_p10), %s752_s8, %s549_s24 }
  0x15   : > { %p551_p13 = pnand (!%p152_p10), %p550_p12, %p687_p4 }
  0x16   : > { %s188_s25 = scalar_select %p187_p11, %s619_s12, 1 }
  0x17   : > { %p552_p0 = pneg %p551_p13  ;;  %s631_s12 = smov [#allocation2]  }
  0x18   : > { %s474_s27 = sshll.u32 %s188_s25, 4  ;;  %s475_s28 = sshll.u32 %s188_s25, 3 }
  0x19   : > { %s194_s3 = scalar_lea.vmem %s802_s0, %s474_s27  ;;  %s204_s6 = scalar_lea.vmem %s803_s1, %s475_s28 }
  0x1a   : > { %v723_v3 = vld [vmem:[%s194_s3] sm:$0x3f]  ;;  %v725_v4 = vld [vmem:[%s194_s3 + $0x8] sm:$0x3f]  ;;  %s553_s25 = sshll.u32 %s631_s12, 4  ;;  %s554_s25 = int_to_ptr.vmem [resolvable:$false] %s553_s25 }
  0x1b   : > { %v208_v5 = vld [vmem:[%s204_s6] sm:$0xff]  ;;  %v210_v6 = vsel %vm209_vm1, %v723_v3, -inf  ;;  %v217_v7 = vsel %vm209_vm1, %v725_v4, -inf  ;;  %s555_s27 = scalar_lea.vmem %s554_s25, 64  ;;  %p556_p1 = scmp.lt.s32.totalorder %s752_s8, %s554_s25 }
  0x1c   : > { %v253_v8 = vcombine.high %v208_v5, %v208_v5  ;;  %v255_v9 = vsel %vm209_vm1, %v208_v5, -inf  ;;  %v211_v10 = vrot.slane %v210_v6, 4  ;;  %v218_v11 = vrot.slane %v217_v7, 4  ;;  %p557_p2 = scmp.lt.s32.totalorder %s555_s27, %s549_s24 }
  0x1d   : > { %v256_v12 = vrot.slane %v255_v9, 4 }
  0x1e   : > { %v262_v13 = vsel %vm209_vm1, %v253_v8, -inf  ;;  %v212_v14 = vmax.f32 %v210_v6, %v211_v10  ;;  %v219_v15 = vmax.f32 %v217_v7, %v218_v11  ;;  %p558_p3 = por %p557_p2, %p556_p1 }
  0x1f   : > { %v257_v16 = vmax.f32 %v255_v9, %v256_v12  ;;  %v263_v17 = vrot.slane %v262_v13, 4 }
  0x20   : > { %v213_v18 = vrot.slane %v212_v14, 2  ;;  %v220_v19 = vrot.slane %v219_v15, 2  ;;  %p559_p5 = pnand %p558_p3, %p552_p0 }
  0x21   : > { %v258_v20 = vrot.slane %v257_v16, 2  ;;  %v264_v21 = vmax.f32 %v262_v13, %v263_v17 }
  0x22   : > { %v214_v22 = vmax.f32 %v212_v14, %v213_v18  ;;  %v221_v23 = vmax.f32 %v219_v15, %v220_v19 }
  0x23   : > { %v259_v24 = vmax.f32 %v257_v16, %v258_v20  ;;  %v265_v25 = vrot.slane %v264_v21, 2 }
  0x24   : > { %v215_v26 = vrot.slane %v214_v22, 1  ;;  %v222_v27 = vrot.slane %v221_v23, 1 }
  0x25   : > { %v260_v28 = vrot.slane %v259_v24, 1  ;;  %v266_v29 = vmax.f32 %v264_v21, %v265_v25 }
  0x26   : > { %v216_v30 = vmax.f32 %v214_v22, %v215_v26  ;;  %v223_v31 = vmax.f32 %v221_v23, %v222_v27 }
  0x27   : > { %v261_v32 = vmax.f32 %v259_v24, %v260_v28  ;;  %v267_v33 = vrot.slane %v266_v29, 1 }
  0x28   : > { %v224_v34 = vsub.f32 %v723_v3, %v216_v30  ;;  %v225_v35 = vsub.f32 %v725_v4, %v223_v31 }
  0x29   : > { %v268_v36 = vmax.f32 %v266_v29, %v267_v33 }
  0x2a   : > { %v226_v37 = vmul.f32 1.442695, %v224_v34  ;;  %v228_v38 = vmul.f32 1.442695, %v225_v35 }
  0x2b   : > { %v271_v39 = vcombine.low %v261_v32, %v268_v36 }
  0x2c   : > { %535 = vpow2.f32 %v226_v37 }
  0x2d   : > { %v273_v40 = vsub.f32 %v208_v5, %v271_v39  ;;  %537 = vpow2.f32 %v228_v38 }
  0x2f   : > { %v274_v41 = vmul.f32 1.442695, %v273_v40  ;;  %v336_v40 = vshrl.u32 %v323_v0, 7 }
  0x31   : > { %539 = vpow2.f32 %v274_v41 }
  0x36   : > { %v536_v42 = vpop.eup %535 }
  0x37   : > { %v538_v43 = vpop.eup %537  ;;  %v230_v44 = vsel %vm209_vm1, %v536_v42, 0.0 }
  0x38   : > { %v231_v45 = vrot.slane %v230_v44, 4  ;;  %v237_v46 = vsel %vm209_vm1, %v538_v43, 0.0 }
  0x39   : > { %v238_v47 = vrot.slane %v237_v46, 4 }
  0x3a   : > { %v232_v49 = vadd.f32 %v231_v45, %v230_v44 }
  0x3b   : > { %v540_v48 = vpop.eup %539  ;;  %v239_v50 = vadd.f32 %v238_v47, %v237_v46 }
  0x3c   : > { %v233_v51 = vrot.slane %v232_v49, 2  ;;  %v299_v53 = vcombine.high %v540_v48, %v540_v48  ;;  %v301_v56 = vsel %vm209_vm1, %v540_v48, 0.0 }
  0x3d   : > { %v240_v52 = vrot.slane %v239_v50, 2  ;;  %v302_v61 = vrot.slane %v301_v56, 4 }
  0x3e   : > { %v234_v54 = vadd.f32 %v233_v51, %v232_v49  ;;  %v308_v59 = vsel %vm209_vm1, %v299_v53, 0.0 }
  0x3f   : > { %v241_v55 = vadd.f32 %v240_v52, %v239_v50  ;;  %v309_v63 = vrot.slane %v308_v59, 4  ;;  %v303_v2 = vadd.f32 %v302_v61, %v301_v56 }
  0x40   : > { %v235_v57 = vrot.slane %v234_v54, 1 }
  0x41   : > { %v242_v58 = vrot.slane %v241_v55, 1  ;;  %v310_v5 = vadd.f32 %v309_v63, %v308_v59  ;;  %v304_v6 = vrot.slane %v303_v2, 2 }
  0x42   : > { %v236_v60 = vadd.f32 %v235_v57, %v234_v54 }
  0x43   : > { %v243_v62 = vadd.f32 %v242_v58, %v241_v55  ;;  %v311_v7 = vrot.slane %v310_v5, 2  ;;  %v305_v9 = vadd.f32 %v304_v6, %v303_v2 }
  0x44   : > { %541 = vlog2.f32 %v236_v60 }
  0x45   : > { %543 = vlog2.f32 %v243_v62  ;;  %v312_v13 = vadd.f32 %v311_v7, %v310_v5  ;;  %v306_v16 = vrot.slane %v305_v9, 1 }
  0x47   : > { %v313_v19 = vrot.slane %v312_v13, 1  ;;  %v307_v21 = vadd.f32 %v306_v16, %v305_v9 }
  0x49   : > { %v314_v23 = vadd.f32 %v313_v19, %v312_v13  ;;  %545 = vrcp.f32 %v307_v21 }
  0x4b   : > { %547 = vrcp.f32 %v314_v23 }
  0x4e   : > { %v542_v8 = vpop.eup %541 }
  0x4f   : > { %v544_v10 = vpop.eup %543  ;;  %v245_v11 = vmul.f32 0.6931472, %v542_v8 }
  0x50   : > { %v247_v12 = vmul.f32 0.6931472, %v544_v10 }
  0x51   : > { %v248_v14 = vadd.f32 %v245_v11, %v216_v30 }
  0x52   : > { %v249_v15 = vadd.f32 %v247_v12, %v223_v31 }
  0x53   : > { %v250_v17 = vsub.f32 %v723_v3, %v248_v14  ;;  %v546_v36 = vpop.eup %545 }
  0x54   : > { %v251_v18 = vsub.f32 %v725_v4, %v249_v15  ;;  %v630_v4 = vmov 1966171168  }
  0x55   : > { %v333_v33 = vunpack.c.l.s4 %v630_v4  ;;  %v548_v41 = vpop.eup %547 }
  0x56   : > { %v278_v20 = vcombine.low %v250_v17, %v251_v18 }
  0x57   : > { %v334_v39 = vunpack.c.0.s8 %v333_v33 }
  0x58   : > { %v280_v22 = vmul.f32 %v540_v48, %v278_v20  ;;  %v328_v48 = vld [vmem:[%s712_s26] sm:$0x3] }
  0x59   : > { %v337_v45 = vsub.s32 %v334_v39, %v336_v40 }
  0x5a   : > { %v282_v24 = vcombine.high %v280_v22, %v280_v22  ;;  %v284_v25 = vsel %vm209_vm1, %v280_v22, 0.0 }
  0x5b   : > { %v285_v26 = vrot.slane %v284_v25, 4 }
  0x5c   : > { %v291_v27 = vsel %vm209_vm1, %v282_v24, 0.0 }
  0x5d   : > { %v286_v28 = vadd.f32 %v285_v26, %v284_v25  ;;  %v292_v29 = vrot.slane %v291_v27, 4 }
  0x5f   : > { %v287_v30 = vrot.slane %v286_v28, 2  ;;  %v293_v31 = vadd.f32 %v292_v29, %v291_v27 }
  0x61   : > { %v288_v3 = vadd.f32 %v287_v30, %v286_v28  ;;  %v294_v32 = vrot.slane %v293_v31, 2 }
  0x63   : > { %v289_v34 = vrot.slane %v288_v3, 1  ;;  %v295_v35 = vadd.f32 %v294_v32, %v293_v31 }
  0x65   : > { %v290_v37 = vadd.f32 %v289_v34, %v288_v3  ;;  %v296_v38 = vrot.slane %v295_v35, 1 }
  0x67   : > { %v297_v42 = vadd.f32 %v296_v38, %v295_v35  ;;  %v317_v43 = vmul.f32 %v546_v36, %v290_v37 }
  0x69   : > { %v318_v44 = vmul.f32 %v548_v41, %v297_v42 }
  0x6b   : > { %v331_v46 = vcombine.low %v317_v43, %v318_v44 }
  0x6d   : > { %v338_v47 = vrot.slane %v331_v46, %v337_v45 }
  0x6f   : > { %v345_v49 = vrot.slane %v338_v47, %v337_v45 }
  0x71   : > { %v347_v50 = vadd.f32 %v345_v49, %v328_v48 }
  0x73   : > { %352 = vst.msk [vmem:[%s712_s26] sm:$0x3] %vm707_vm0, %v347_v50 }
  0x74   : > { %562 = shalt.err (!%p559_p5)
}
  0x75   : > { %s563_s23 = scalar_lea.hbm %s750_s18, 32  ;;  %s567_s29 = scalar_lea.hbm %s804_s2, 64 }
  0x76   : > { %p564_p6 = scmp.ne.s32.totalorder %s750_s18, %s563_s23  ;;  %p568_p10 = scmp.lt.u32.totalorder %s750_s18, %s804_s2 }
  0x77   : > { %p569_p11 = scmp.lt.u32.totalorder %s567_s29, %s563_s23  ;;  %p571_p13 = scmp.lt.u32.totalorder %s563_s23, %s750_s18 }
  0x78   : > { %p565_p7 = pnand %p564_p6, %p687_p4 }
  0x79   : > { %p570_p12 = por %p569_p11, %p568_p10 }
  0x7a   : > { %p566_p9 = pneg %p565_p7 }
  0x7b   : > { %p572_p0 = por %p571_p13, %p570_p12 }
  0x7d   : > { %p573_p1 = pnand %p572_p0, %p566_p9 }
  0x7f   : > { %576 = shalt.err (!%p573_p1)
}
  0x80   : > { %477 = dma.vmem_to_hbm [thread:$0]  (%p687_p4), %s752_s8, 32, %s750_s18, %s354_s20  }
  0x81 PF: > { %p483_p2 = scmp.ge.s32.totalorder %s627_s14, 2  ;;  %s380_s4 = sand.u32 1, %s607_s9  }
  0x82   : > { %s381_s5 = scalar_lea.sflag [#allocation3], %s380_s4 }
  0x83   : > { %p480_p3 = pnand %p483_p2, %p694_p8 }
  0x85   : > { %602 = dma.done.wait (!%p480_p3), %s381_s5, 32  }
  0x86   : > { %604 = vsyncadd (!%p480_p3), %s381_s5, 4294967264  ;;  %s15_s14 = sadd.s32 1, %s627_s14   ;;  %s809_s9 = smov %s611_s10 }
  0x87   : > { %p12_p5 = scmp.ge.s32.totalorder %s15_s14, 4   ;;  %s810_s10 = smov %s615_s11 }
  0x88   : > { %s811_s11 = smov %s700_s22  ;;  %s812_s12 = smov %s623_s13 }
  0x89   : > { %s813_s13 = smov %s815_s17  ;;  %14 = sbr.rel (!%p12_p5) target bundleno = 4 (0x4), region = 70 }
  0x90   :  { %386 = vsyncpa [#allocation3], 1 }
  0x91   :  { %388 = vsyncpa [#allocation3 + $0x1], 1 }

</bundles_post_ra>
